<compile_context>
chip_gen: v5e
topology: v5e:2x2
jax: 0.10.0
libtpu: 0.0.40
codegen_flags: <defaults>
</compile_context>

<pallas_src>
import numpy as np
import jax
import jax.numpy as jnp
from jax.experimental import pallas as pl
from jax.experimental.pallas import tpu as pltpu


def _erf(x):
    # Numerical-Recipes erfc rational approximation, |abs err| < 1.2e-7.
    # TODO(synk): lax.erf has no guaranteed Mosaic lowering; use a polynomial erf.
    a = jnp.abs(x)
    d = 1.0 + 0.5 * a
    r = pl.reciprocal(d, approx=True)      # EUP slot (idle otherwise)
    t = r * (2.0 - d * r)                  # one Newton step -> ~1e-8 rel error
    poly = -1.26551223 + t * (1.00002368 + t * (0.37409196 + t * (0.09678418 +
           t * (-0.18628806 + t * (0.27886807 + t * (-1.13520398 + t * (1.48851587 +
           t * (-0.82215223 + t * 0.17087277))))))))
    erfc = t * jnp.exp(-a * a + poly)
    return jnp.where(x >= 0.0, 1.0 - erfc, erfc - 1.0)


def _gelu_erf(v):
    # matches the torch graph:  (v*0.5) * (erf(v*0.7071067811865476) + 1)
    return (v * 0.5) * (_erf(v * 0.7071067811865476) + 1.0)


def _make_kernel(h, w, c):
    hw = h * w

    def kernel(x_ref, wp_ref, out_ref):
        x = x_ref[...]                                       # (C, HW)

        # Flat-position boundary masks for the 3x3 halo (computed once).
        pos = jax.lax.broadcasted_iota(jnp.int32, (1, hw), 1)
        col = pos % w
        col_ge1 = col >= 1                # valid for dx == 0 taps
        col_lt = col < (w - 1)            # valid for dx == 2 taps
        row_ge1 = pos >= w                # row >= 1     (dy == 0 taps)
        row_lt = pos < (h - 1) * w        # row <= h-2   (dy == 2 taps)

        # Nine shifted windows via XLU rotation + masks; roll wrap-around values
        # land exactly on the positions the masks zero out.
        taps = []
        for dy in range(3):
            for dx in range(3):
                s = (dy - 1) * w + (dx - 1)
                t = x if s == 0 else pltpu.roll(x, shift=(-s) % hw, axis=1)
                m = None
                if dx == 0:
                    m = col_ge1
                elif dx == 2:
                    m = col_lt
                if dy == 0:
                    m = row_ge1 if m is None else jnp.logical_and(m, row_ge1)
                elif dy == 2:
                    m = row_lt if m is None else jnp.logical_and(m, row_lt)
                if m is not None:
                    t = jnp.where(m, t, 0.0)
                taps.append(t)
        taps_mat = jnp.concatenate(taps, axis=0)             # (9C, HW)

        # Packed weights: rows 0:2C = [w13 | b13], rows 2C:3C = [w2 | b2 | 0].
        wp = wp_ref[...]                                     # (3C, 9C+1)
        w13 = wp[0:2 * c, 0:9 * c]                           # (2C, 9C)
        b13 = wp[0:2 * c, 9 * c:9 * c + 1]                   # (2C, 1)
        w2 = wp[2 * c:3 * c, 0:c]                            # (C, C)
        b2 = wp[2 * c:3 * c, c:c + 1]                        # (C, 1)

        # conv1 and conv3 fused into a single MXU matmul (+ bias epilogue).
        acc13 = jnp.dot(w13, taps_mat,
                        preferred_element_type=jnp.float32) + b13
        v1 = acc13[0:c, :]            # conv1(x) + b1
        v13 = acc13[c:2 * c, :]       # conv3(x) + b3   (padding=1 semantics)

        v6 = _gelu_erf(v1)
        v7 = jnp.dot(w2, v6, preferred_element_type=jnp.float32) + b2   # conv2 1x1
        v12 = _gelu_erf(v7)
        v18 = _gelu_erf(v13)

        out_ref[...] = (v12 + v18).astype(out_ref.dtype)

    return kernel


def prepare_params(params):
    """Pack torch-layout conv weights into ONE VMEM buffer.

    Call once, outside the hot path (weight packing is NOT redone per forward)."""
    w1, b1, w2, b2, w3, b3 = params
    c = w1.shape[0]
    # (Cout, Cin, kh, kw) -> (Cout, 9*Cin), tap-major / cin-minor to match the
    # in-kernel taps_mat row order.
    w1_m = jnp.transpose(w1, (0, 2, 3, 1)).reshape(c, 9 * c)
    w3_m = jnp.transpose(w3, (0, 2, 3, 1)).reshape(c, 9 * c)
    w13 = jnp.concatenate([w1_m, w3_m], axis=0)              # (2C, 9C)
    b13 = jnp.concatenate([b1, b3], axis=0)[:, None]         # (2C, 1)
    w2_m = w2[:, :, 0, 0]                                    # (C, C)
    b2_m = b2[:, None]                                       # (C, 1)

    top = jnp.concatenate([w13, b13], axis=1)                # (2C, 9C+1)
    pad = jnp.zeros((c, 9 * c - c), w1.dtype)
    bot = jnp.concatenate([w2_m, b2_m, pad], axis=1)         # (C, 9C+1)
    wpack = jnp.concatenate([top, bot], axis=0)              # (3C, 9C+1)
    return jax.device_put(wpack)


@jax.jit
def model_forward(x_nchw, wpack):
    n, c, h, w = x_nchw.shape
    assert n == 1 and c == 8
    hw = h * w
    # TODO(synk): if H*W or batch grows, add a 1-D grid over the HW axis (halo'd
    # BlockSpecs, dimension_semantics=("parallel",) for v7x megacore, explicit
    # vmem_limit_bytes) and fold batch into the lane axis; unnecessary at 16x16.
    xflat = x_nchw.reshape(c, hw)                            # free reshape (N == 1)
    vmem = pl.BlockSpec(memory_space=pltpu.MemorySpace.VMEM)
    out = pl.pallas_call(
        _make_kernel(h, w, c),
        out_shape=jax.ShapeDtypeStruct((c, hw), x_nchw.dtype),
        in_specs=[vmem, vmem],
        out_specs=vmem,
    )(xflat, wpack)
    return out.reshape(1, c, h, w)                           # free reshape


def _reference(x, params):
    w1, b1, w2, b2, w3, b3 = params
    dn = ('NCHW', 'OIHW', 'NCHW')

    def conv(v, wgt, b, p):
        y = jax.lax.conv_general_dilated(v, wgt, (1, 1), [(p, p), (p, p)],
                                         dimension_numbers=dn)
        return y + b[None, :, None, None]

    def gelu(v):
        return (v * 0.5) * (jax.scipy.special.erf(v * 0.7071067811865476) + 1.0)

    v6 = gelu(conv(x, w1, b1, 1))
    v12 = gelu(conv(v6, w2, b2, 0))
    v18 = gelu(conv(x, w3, b3, 3))
    return v12 + v18[:, :, 2:-2, 2:-2]


if __name__ == "__main__":
    key = jax.random.PRNGKey(0)
    ks = jax.random.split(key, 7)
    C = 8

    def uinit(k, shape, fan_in):
        b = 1.0 / np.sqrt(fan_in)
        return jax.random.uniform(k, shape, jnp.float32, -b, b)

    w1 = uinit(ks[0], (C, C, 3, 3), C * 9)
    b1 = uinit(ks[1], (C,), C * 9)
    w2 = uinit(ks[2], (C, C, 1, 1), C)
    b2 = uinit(ks[3], (C,), C)
    w3 = uinit(ks[4], (C, C, 3, 3), C * 9)
    b3 = uinit(ks[5], (C,), C * 9)
    params = (w1, b1, w2, b2, w3, b3)

    x = jax.random.normal(ks[6], (1, C, 16, 16), jnp.float32)

    wpack = prepare_params(params)          # one-time weight packing (hoisted)
    out = jax.block_until_ready(model_forward(x, wpack))
    ref = _reference(x, params)
    np.testing.assert_allclose(np.asarray(out), np.asarray(ref), rtol=1e-4, atol=1e-4)
    print("KERNEL_OK")
</pallas_src>

<mosaic_0001>
module attributes {stable_mosaic.version = 11 : i64} {
  func.func @kernel(%arg0: memref<8x256xf32, #tpu.memory_space<vmem>>, %arg1: memref<24x73xf32, #tpu.memory_space<vmem>>, %arg2: memref<8x256xf32, #tpu.memory_space<vmem>>) attributes {dimension_semantics = [], scalar_prefetch = 0 : i64, scratch_operands = 0 : i64, tpu.core_type = #tpu.core_type<tc>} {
    %c0 = arith.constant 0 : index
    %c0_0 = arith.constant 0 : index
    %0 = vector.load %arg0[%c0, %c0_0] : memref<8x256xf32, #tpu.memory_space<vmem>>, vector<8x256xf32>
    %1 = tpu.iota {dimensions = array<i32: 1>} : vector<1x256xi32>
    %c16_i32 = arith.constant 16 : i32
    %c0_i32 = arith.constant 0 : i32
    %2 = arith.cmpi eq, %c16_i32, %c0_i32 : i32
    %c1_i32 = arith.constant 1 : i32
    %3 = arith.select %2, %c1_i32, %c16_i32 : i32
    %4 = vector.broadcast %3 : i32 to vector<1x256xi32>
    %5 = arith.remsi %1, %4 : vector<1x256xi32>
    %c0_i32_1 = arith.constant 0 : i32
    %6 = vector.broadcast %c0_i32_1 : i32 to vector<1x256xi32>
    %7 = arith.cmpi ne, %5, %6 : vector<1x256xi32>
    %c0_i32_2 = arith.constant 0 : i32
    %8 = vector.broadcast %c0_i32_2 : i32 to vector<1x256xi32>
    %9 = arith.cmpi slt, %5, %8 : vector<1x256xi32>
    %c0_i32_3 = arith.constant 0 : i32
    %10 = arith.cmpi slt, %3, %c0_i32_3 : i32
    %11 = vector.broadcast %10 : i1 to vector<1x256xi1>
    %12 = vector.broadcast %11 : vector<1x256xi1> to vector<1x256xi1>
    %13 = arith.xori %9, %12 : vector<1x256xi1>
    %14 = arith.andi %13, %7 : vector<1x256xi1>
    %15 = vector.broadcast %3 : i32 to vector<1x256xi32>
    %16 = arith.addi %5, %15 : vector<1x256xi32>
    %17 = arith.select %14, %16, %5 : vector<1x256xi1>, vector<1x256xi32>
    %c1_i32_4 = arith.constant 1 : i32
    %18 = vector.broadcast %c1_i32_4 : i32 to vector<1x256xi32>
    %19 = arith.cmpi sge, %17, %18 : vector<1x256xi32>
    %c15_i32 = arith.constant 15 : i32
    %20 = vector.broadcast %c15_i32 : i32 to vector<1x256xi32>
    %21 = arith.cmpi slt, %17, %20 : vector<1x256xi32>
    %c16_i32_5 = arith.constant 16 : i32
    %22 = vector.broadcast %c16_i32_5 : i32 to vector<1x256xi32>
    %23 = arith.cmpi sge, %1, %22 : vector<1x256xi32>
    %c240_i32 = arith.constant 240 : i32
    %24 = vector.broadcast %c240_i32 : i32 to vector<1x256xi32>
    %25 = arith.cmpi slt, %1, %24 : vector<1x256xi32>
    %c17_i32 = arith.constant 17 : i32
    %26 = tpu.dynamic_rotate %0 by %c17_i32 dim 1 : vector<8x256xf32>, i32 -> vector<8x256xf32>
    %27 = arith.andi %19, %23 : vector<1x256xi1>
    %cst = arith.constant 0.000000e+00 : f32
    %28 = vector.shape_cast %27 : vector<1x256xi1> to vector<1x256xi1>
    %29 = vector.broadcast %28 : vector<1x256xi1> to vector<8x256xi1>
    %30 = vector.broadcast %cst : f32 to vector<8x256xf32>
    %31 = arith.select %29, %26, %30 : vector<8x256xi1>, vector<8x256xf32>
    %c16_i32_6 = arith.constant 16 : i32
    %32 = tpu.dynamic_rotate %0 by %c16_i32_6 dim 1 : vector<8x256xf32>, i32 -> vector<8x256xf32>
    %cst_7 = arith.constant 0.000000e+00 : f32
    %33 = vector.shape_cast %23 : vector<1x256xi1> to vector<1x256xi1>
    %34 = vector.broadcast %33 : vector<1x256xi1> to vector<8x256xi1>
    %35 = vector.broadcast %cst_7 : f32 to vector<8x256xf32>
    %36 = arith.select %34, %32, %35 : vector<8x256xi1>, vector<8x256xf32>
    %c15_i32_8 = arith.constant 15 : i32
    %37 = tpu.dynamic_rotate %0 by %c15_i32_8 dim 1 : vector<8x256xf32>, i32 -> vector<8x256xf32>
    %38 = arith.andi %21, %23 : vector<1x256xi1>
    %cst_9 = arith.constant 0.000000e+00 : f32
    %39 = vector.shape_cast %38 : vector<1x256xi1> to vector<1x256xi1>
    %40 = vector.broadcast %39 : vector<1x256xi1> to vector<8x256xi1>
    %41 = vector.broadcast %cst_9 : f32 to vector<8x256xf32>
    %42 = arith.select %40, %37, %41 : vector<8x256xi1>, vector<8x256xf32>
    %c1_i32_10 = arith.constant 1 : i32
    %43 = tpu.dynamic_rotate %0 by %c1_i32_10 dim 1 : vector<8x256xf32>, i32 -> vector<8x256xf32>
    %cst_11 = arith.constant 0.000000e+00 : f32
    %44 = vector.shape_cast %19 : vector<1x256xi1> to vector<1x256xi1>
    %45 = vector.broadcast %44 : vector<1x256xi1> to vector<8x256xi1>
    %46 = vector.broadcast %cst_11 : f32 to vector<8x256xf32>
    %47 = arith.select %45, %43, %46 : vector<8x256xi1>, vector<8x256xf32>
    %c255_i32 = arith.constant 255 : i32
    %48 = tpu.dynamic_rotate %0 by %c255_i32 dim 1 : vector<8x256xf32>, i32 -> vector<8x256xf32>
    %cst_12 = arith.constant 0.000000e+00 : f32
    %49 = vector.shape_cast %21 : vector<1x256xi1> to vector<1x256xi1>
    %50 = vector.broadcast %49 : vector<1x256xi1> to vector<8x256xi1>
    %51 = vector.broadcast %cst_12 : f32 to vector<8x256xf32>
    %52 = arith.select %50, %48, %51 : vector<8x256xi1>, vector<8x256xf32>
    %c241_i32 = arith.constant 241 : i32
    %53 = tpu.dynamic_rotate %0 by %c241_i32 dim 1 : vector<8x256xf32>, i32 -> vector<8x256xf32>
    %54 = arith.andi %19, %25 : vector<1x256xi1>
    %cst_13 = arith.constant 0.000000e+00 : f32
    %55 = vector.shape_cast %54 : vector<1x256xi1> to vector<1x256xi1>
    %56 = vector.broadcast %55 : vector<1x256xi1> to vector<8x256xi1>
    %57 = vector.broadcast %cst_13 : f32 to vector<8x256xf32>
    %58 = arith.select %56, %53, %57 : vector<8x256xi1>, vector<8x256xf32>
    %c240_i32_14 = arith.constant 240 : i32
    %59 = tpu.dynamic_rotate %0 by %c240_i32_14 dim 1 : vector<8x256xf32>, i32 -> vector<8x256xf32>
    %cst_15 = arith.constant 0.000000e+00 : f32
    %60 = vector.shape_cast %25 : vector<1x256xi1> to vector<1x256xi1>
    %61 = vector.broadcast %60 : vector<1x256xi1> to vector<8x256xi1>
    %62 = vector.broadcast %cst_15 : f32 to vector<8x256xf32>
    %63 = arith.select %61, %59, %62 : vector<8x256xi1>, vector<8x256xf32>
    %c239_i32 = arith.constant 239 : i32
    %64 = tpu.dynamic_rotate %0 by %c239_i32 dim 1 : vector<8x256xf32>, i32 -> vector<8x256xf32>
    %65 = arith.andi %21, %25 : vector<1x256xi1>
    %cst_16 = arith.constant 0.000000e+00 : f32
    %66 = vector.shape_cast %65 : vector<1x256xi1> to vector<1x256xi1>
    %67 = vector.broadcast %66 : vector<1x256xi1> to vector<8x256xi1>
    %68 = vector.broadcast %cst_16 : f32 to vector<8x256xf32>
    %69 = arith.select %67, %64, %68 : vector<8x256xi1>, vector<8x256xf32>
    %70 = tpu.concatenate %31, %36, %42, %47, %0, %52, %58, %63, %69 in 0 : vector<8x256xf32>, vector<8x256xf32>, vector<8x256xf32>, vector<8x256xf32>, vector<8x256xf32>, vector<8x256xf32>, vector<8x256xf32>, vector<8x256xf32>, vector<8x256xf32> -> vector<72x256xf32>
    %c0_17 = arith.constant 0 : index
    %c0_18 = arith.constant 0 : index
    %71 = vector.load %arg1[%c0_17, %c0_18] : memref<24x73xf32, #tpu.memory_space<vmem>>, vector<24x73xf32>
    %72 = vector.extract_strided_slice %71 {offsets = [0, 0], sizes = [16, 72], strides = [1, 1]} : vector<24x73xf32> to vector<16x72xf32>
    %73 = vector.extract_strided_slice %71 {offsets = [0, 72], sizes = [16, 1], strides = [1, 1]} : vector<24x73xf32> to vector<16x1xf32>
    %74 = vector.extract_strided_slice %71 {offsets = [16, 0], sizes = [8, 8], strides = [1, 1]} : vector<24x73xf32> to vector<8x8xf32>
    %75 = vector.extract_strided_slice %71 {offsets = [16, 8], sizes = [8, 1], strides = [1, 1]} : vector<24x73xf32> to vector<8x1xf32>
    %cst_19 = arith.constant dense<0.000000e+00> : vector<16x256xf32>
    %76 = tpu.matmul %72, %70, %cst_19 {dimension_numbers = #tpu.dot_dimension_numbers<[1], [0], [0], [1], [0, 0, 1, 1], [], []>} : vector<16x72xf32>, vector<72x256xf32>, vector<16x256xf32> -> vector<16x256xf32>
    %77 = vector.broadcast %73 : vector<16x1xf32> to vector<16x256xf32>
    %78 = arith.addf %76, %77 : vector<16x256xf32>
    %79 = vector.extract_strided_slice %78 {offsets = [0, 0], sizes = [8, 256], strides = [1, 1]} : vector<16x256xf32> to vector<8x256xf32>
    %80 = vector.extract_strided_slice %78 {offsets = [8, 0], sizes = [8, 256], strides = [1, 1]} : vector<16x256xf32> to vector<8x256xf32>
    %cst_20 = arith.constant 5.000000e-01 : f32
    %81 = vector.broadcast %cst_20 : f32 to vector<8x256xf32>
    %82 = arith.mulf %79, %81 : vector<8x256xf32>
    %cst_21 = arith.constant 0.707106769 : f32
    %83 = vector.broadcast %cst_21 : f32 to vector<8x256xf32>
    %84 = arith.mulf %79, %83 : vector<8x256xf32>
    %85 = math.absf %84 : vector<8x256xf32>
    %cst_22 = arith.constant 5.000000e-01 : f32
    %86 = vector.broadcast %cst_22 : f32 to vector<8x256xf32>
    %87 = arith.mulf %86, %85 : vector<8x256xf32>
    %cst_23 = arith.constant 1.000000e+00 : f32
    %88 = vector.broadcast %cst_23 : f32 to vector<8x256xf32>
    %89 = arith.addf %88, %87 : vector<8x256xf32>
    %90 = tpu.reciprocal %89 {approx = true} : vector<8x256xf32> -> vector<8x256xf32>
    %91 = arith.mulf %89, %90 : vector<8x256xf32>
    %cst_24 = arith.constant 2.000000e+00 : f32
    %92 = vector.broadcast %cst_24 : f32 to vector<8x256xf32>
    %93 = arith.subf %92, %91 : vector<8x256xf32>
    %94 = arith.mulf %90, %93 : vector<8x256xf32>
    %cst_25 = arith.constant 0.170872763 : f32
    %95 = vector.broadcast %cst_25 : f32 to vector<8x256xf32>
    %96 = arith.mulf %94, %95 : vector<8x256xf32>
    %cst_26 = arith.constant -0.822152256 : f32
    %97 = vector.broadcast %cst_26 : f32 to vector<8x256xf32>
    %98 = arith.addf %97, %96 : vector<8x256xf32>
    %99 = arith.mulf %94, %98 : vector<8x256xf32>
    %cst_27 = arith.constant 1.48851585 : f32
    %100 = vector.broadcast %cst_27 : f32 to vector<8x256xf32>
    %101 = arith.addf %100, %99 : vector<8x256xf32>
    %102 = arith.mulf %94, %101 : vector<8x256xf32>
    %cst_28 = arith.constant -1.13520396 : f32
    %103 = vector.broadcast %cst_28 : f32 to vector<8x256xf32>
    %104 = arith.addf %103, %102 : vector<8x256xf32>
    %105 = arith.mulf %94, %104 : vector<8x256xf32>
    %cst_29 = arith.constant 0.278868079 : f32
    %106 = vector.broadcast %cst_29 : f32 to vector<8x256xf32>
    %107 = arith.addf %106, %105 : vector<8x256xf32>
    %108 = arith.mulf %94, %107 : vector<8x256xf32>
    %cst_30 = arith.constant -0.186288059 : f32
    %109 = vector.broadcast %cst_30 : f32 to vector<8x256xf32>
    %110 = arith.addf %109, %108 : vector<8x256xf32>
    %111 = arith.mulf %94, %110 : vector<8x256xf32>
    %cst_31 = arith.constant 0.0967841818 : f32
    %112 = vector.broadcast %cst_31 : f32 to vector<8x256xf32>
    %113 = arith.addf %112, %111 : vector<8x256xf32>
    %114 = arith.mulf %94, %113 : vector<8x256xf32>
    %cst_32 = arith.constant 0.374091953 : f32
    %115 = vector.broadcast %cst_32 : f32 to vector<8x256xf32>
    %116 = arith.addf %115, %114 : vector<8x256xf32>
    %117 = arith.mulf %94, %116 : vector<8x256xf32>
    %cst_33 = arith.constant 1.00002372 : f32
    %118 = vector.broadcast %cst_33 : f32 to vector<8x256xf32>
    %119 = arith.addf %118, %117 : vector<8x256xf32>
    %120 = arith.mulf %94, %119 : vector<8x256xf32>
    %cst_34 = arith.constant -1.26551223 : f32
    %121 = vector.broadcast %cst_34 : f32 to vector<8x256xf32>
    %122 = arith.addf %121, %120 : vector<8x256xf32>
    %cst_35 = arith.constant 0.000000e+00 : f32
    %123 = vector.broadcast %cst_35 : f32 to vector<8x256xf32>
    %124 = arith.subf %123, %85 : vector<8x256xf32>
    %125 = arith.mulf %124, %85 : vector<8x256xf32>
    %126 = arith.addf %125, %122 : vector<8x256xf32>
    %127 = math.exp %126 : vector<8x256xf32>
    %128 = arith.mulf %94, %127 : vector<8x256xf32>
    %cst_36 = arith.constant 0.000000e+00 : f32
    %129 = vector.broadcast %cst_36 : f32 to vector<8x256xf32>
    %130 = arith.cmpf oge, %84, %129 : vector<8x256xf32>
    %cst_37 = arith.constant 1.000000e+00 : f32
    %131 = vector.broadcast %cst_37 : f32 to vector<8x256xf32>
    %132 = arith.subf %131, %128 : vector<8x256xf32>
    %cst_38 = arith.constant 1.000000e+00 : f32
    %133 = vector.broadcast %cst_38 : f32 to vector<8x256xf32>
    %134 = arith.subf %128, %133 : vector<8x256xf32>
    %135 = arith.select %130, %132, %134 : vector<8x256xi1>, vector<8x256xf32>
    %cst_39 = arith.constant 1.000000e+00 : f32
    %136 = vector.broadcast %cst_39 : f32 to vector<8x256xf32>
    %137 = arith.addf %135, %136 : vector<8x256xf32>
    %138 = arith.mulf %82, %137 : vector<8x256xf32>
    %cst_40 = arith.constant dense<0.000000e+00> : vector<8x256xf32>
    %139 = tpu.matmul %74, %138, %cst_40 {dimension_numbers = #tpu.dot_dimension_numbers<[1], [0], [0], [1], [0, 0, 1, 1], [], []>} : vector<8x8xf32>, vector<8x256xf32>, vector<8x256xf32> -> vector<8x256xf32>
    %140 = vector.broadcast %75 : vector<8x1xf32> to vector<8x256xf32>
    %141 = arith.addf %139, %140 : vector<8x256xf32>
    %cst_41 = arith.constant 5.000000e-01 : f32
    %142 = vector.broadcast %cst_41 : f32 to vector<8x256xf32>
    %143 = arith.mulf %141, %142 : vector<8x256xf32>
    %cst_42 = arith.constant 0.707106769 : f32
    %144 = vector.broadcast %cst_42 : f32 to vector<8x256xf32>
    %145 = arith.mulf %141, %144 : vector<8x256xf32>
    %146 = math.absf %145 : vector<8x256xf32>
    %cst_43 = arith.constant 5.000000e-01 : f32
    %147 = vector.broadcast %cst_43 : f32 to vector<8x256xf32>
    %148 = arith.mulf %147, %146 : vector<8x256xf32>
    %cst_44 = arith.constant 1.000000e+00 : f32
    %149 = vector.broadcast %cst_44 : f32 to vector<8x256xf32>
    %150 = arith.addf %149, %148 : vector<8x256xf32>
    %151 = tpu.reciprocal %150 {approx = true} : vector<8x256xf32> -> vector<8x256xf32>
    %152 = arith.mulf %150, %151 : vector<8x256xf32>
    %cst_45 = arith.constant 2.000000e+00 : f32
    %153 = vector.broadcast %cst_45 : f32 to vector<8x256xf32>
    %154 = arith.subf %153, %152 : vector<8x256xf32>
    %155 = arith.mulf %151, %154 : vector<8x256xf32>
    %cst_46 = arith.constant 0.170872763 : f32
    %156 = vector.broadcast %cst_46 : f32 to vector<8x256xf32>
    %157 = arith.mulf %155, %156 : vector<8x256xf32>
    %cst_47 = arith.constant -0.822152256 : f32
    %158 = vector.broadcast %cst_47 : f32 to vector<8x256xf32>
    %159 = arith.addf %158, %157 : vector<8x256xf32>
    %160 = arith.mulf %155, %159 : vector<8x256xf32>
    %cst_48 = arith.constant 1.48851585 : f32
    %161 = vector.broadcast %cst_48 : f32 to vector<8x256xf32>
    %162 = arith.addf %161, %160 : vector<8x256xf32>
    %163 = arith.mulf %155, %162 : vector<8x256xf32>
    %cst_49 = arith.constant -1.13520396 : f32
    %164 = vector.broadcast %cst_49 : f32 to vector<8x256xf32>
    %165 = arith.addf %164, %163 : vector<8x256xf32>
    %166 = arith.mulf %155, %165 : vector<8x256xf32>
    %cst_50 = arith.constant 0.278868079 : f32
    %167 = vector.broadcast %cst_50 : f32 to vector<8x256xf32>
    %168 = arith.addf %167, %166 : vector<8x256xf32>
    %169 = arith.mulf %155, %168 : vector<8x256xf32>
    %cst_51 = arith.constant -0.186288059 : f32
    %170 = vector.broadcast %cst_51 : f32 to vector<8x256xf32>
    %171 = arith.addf %170, %169 : vector<8x256xf32>
    %172 = arith.mulf %155, %171 : vector<8x256xf32>
    %cst_52 = arith.constant 0.0967841818 : f32
    %173 = vector.broadcast %cst_52 : f32 to vector<8x256xf32>
    %174 = arith.addf %173, %172 : vector<8x256xf32>
    %175 = arith.mulf %155, %174 : vector<8x256xf32>
    %cst_53 = arith.constant 0.374091953 : f32
    %176 = vector.broadcast %cst_53 : f32 to vector<8x256xf32>
    %177 = arith.addf %176, %175 : vector<8x256xf32>
    %178 = arith.mulf %155, %177 : vector<8x256xf32>
    %cst_54 = arith.constant 1.00002372 : f32
    %179 = vector.broadcast %cst_54 : f32 to vector<8x256xf32>
    %180 = arith.addf %179, %178 : vector<8x256xf32>
    %181 = arith.mulf %155, %180 : vector<8x256xf32>
    %cst_55 = arith.constant -1.26551223 : f32
    %182 = vector.broadcast %cst_55 : f32 to vector<8x256xf32>
    %183 = arith.addf %182, %181 : vector<8x256xf32>
    %cst_56 = arith.constant 0.000000e+00 : f32
    %184 = vector.broadcast %cst_56 : f32 to vector<8x256xf32>
    %185 = arith.subf %184, %146 : vector<8x256xf32>
    %186 = arith.mulf %185, %146 : vector<8x256xf32>
    %187 = arith.addf %186, %183 : vector<8x256xf32>
    %188 = math.exp %187 : vector<8x256xf32>
    %189 = arith.mulf %155, %188 : vector<8x256xf32>
    %cst_57 = arith.constant 0.000000e+00 : f32
    %190 = vector.broadcast %cst_57 : f32 to vector<8x256xf32>
    %191 = arith.cmpf oge, %145, %190 : vector<8x256xf32>
    %cst_58 = arith.constant 1.000000e+00 : f32
    %192 = vector.broadcast %cst_58 : f32 to vector<8x256xf32>
    %193 = arith.subf %192, %189 : vector<8x256xf32>
    %cst_59 = arith.constant 1.000000e+00 : f32
    %194 = vector.broadcast %cst_59 : f32 to vector<8x256xf32>
    %195 = arith.subf %189, %194 : vector<8x256xf32>
    %196 = arith.select %191, %193, %195 : vector<8x256xi1>, vector<8x256xf32>
    %cst_60 = arith.constant 1.000000e+00 : f32
    %197 = vector.broadcast %cst_60 : f32 to vector<8x256xf32>
    %198 = arith.addf %196, %197 : vector<8x256xf32>
    %199 = arith.mulf %143, %198 : vector<8x256xf32>
    %cst_61 = arith.constant 5.000000e-01 : f32
    %200 = vector.broadcast %cst_61 : f32 to vector<8x256xf32>
    %201 = arith.mulf %80, %200 : vector<8x256xf32>
    %cst_62 = arith.constant 0.707106769 : f32
    %202 = vector.broadcast %cst_62 : f32 to vector<8x256xf32>
    %203 = arith.mulf %80, %202 : vector<8x256xf32>
    %204 = math.absf %203 : vector<8x256xf32>
    %cst_63 = arith.constant 5.000000e-01 : f32
    %205 = vector.broadcast %cst_63 : f32 to vector<8x256xf32>
    %206 = arith.mulf %205, %204 : vector<8x256xf32>
    %cst_64 = arith.constant 1.000000e+00 : f32
    %207 = vector.broadcast %cst_64 : f32 to vector<8x256xf32>
    %208 = arith.addf %207, %206 : vector<8x256xf32>
    %209 = tpu.reciprocal %208 {approx = true} : vector<8x256xf32> -> vector<8x256xf32>
    %210 = arith.mulf %208, %209 : vector<8x256xf32>
    %cst_65 = arith.constant 2.000000e+00 : f32
    %211 = vector.broadcast %cst_65 : f32 to vector<8x256xf32>
    %212 = arith.subf %211, %210 : vector<8x256xf32>
    %213 = arith.mulf %209, %212 : vector<8x256xf32>
    %cst_66 = arith.constant 0.170872763 : f32
    %214 = vector.broadcast %cst_66 : f32 to vector<8x256xf32>
    %215 = arith.mulf %213, %214 : vector<8x256xf32>
    %cst_67 = arith.constant -0.822152256 : f32
    %216 = vector.broadcast %cst_67 : f32 to vector<8x256xf32>
    %217 = arith.addf %216, %215 : vector<8x256xf32>
    %218 = arith.mulf %213, %217 : vector<8x256xf32>
    %cst_68 = arith.constant 1.48851585 : f32
    %219 = vector.broadcast %cst_68 : f32 to vector<8x256xf32>
    %220 = arith.addf %219, %218 : vector<8x256xf32>
    %221 = arith.mulf %213, %220 : vector<8x256xf32>
    %cst_69 = arith.constant -1.13520396 : f32
    %222 = vector.broadcast %cst_69 : f32 to vector<8x256xf32>
    %223 = arith.addf %222, %221 : vector<8x256xf32>
    %224 = arith.mulf %213, %223 : vector<8x256xf32>
    %cst_70 = arith.constant 0.278868079 : f32
    %225 = vector.broadcast %cst_70 : f32 to vector<8x256xf32>
    %226 = arith.addf %225, %224 : vector<8x256xf32>
    %227 = arith.mulf %213, %226 : vector<8x256xf32>
    %cst_71 = arith.constant -0.186288059 : f32
    %228 = vector.broadcast %cst_71 : f32 to vector<8x256xf32>
    %229 = arith.addf %228, %227 : vector<8x256xf32>
    %230 = arith.mulf %213, %229 : vector<8x256xf32>
    %cst_72 = arith.constant 0.0967841818 : f32
    %231 = vector.broadcast %cst_72 : f32 to vector<8x256xf32>
    %232 = arith.addf %231, %230 : vector<8x256xf32>
    %233 = arith.mulf %213, %232 : vector<8x256xf32>
    %cst_73 = arith.constant 0.374091953 : f32
    %234 = vector.broadcast %cst_73 : f32 to vector<8x256xf32>
    %235 = arith.addf %234, %233 : vector<8x256xf32>
    %236 = arith.mulf %213, %235 : vector<8x256xf32>
    %cst_74 = arith.constant 1.00002372 : f32
    %237 = vector.broadcast %cst_74 : f32 to vector<8x256xf32>
    %238 = arith.addf %237, %236 : vector<8x256xf32>
    %239 = arith.mulf %213, %238 : vector<8x256xf32>
    %cst_75 = arith.constant -1.26551223 : f32
    %240 = vector.broadcast %cst_75 : f32 to vector<8x256xf32>
    %241 = arith.addf %240, %239 : vector<8x256xf32>
    %cst_76 = arith.constant 0.000000e+00 : f32
    %242 = vector.broadcast %cst_76 : f32 to vector<8x256xf32>
    %243 = arith.subf %242, %204 : vector<8x256xf32>
    %244 = arith.mulf %243, %204 : vector<8x256xf32>
    %245 = arith.addf %244, %241 : vector<8x256xf32>
    %246 = math.exp %245 : vector<8x256xf32>
    %247 = arith.mulf %213, %246 : vector<8x256xf32>
    %cst_77 = arith.constant 0.000000e+00 : f32
    %248 = vector.broadcast %cst_77 : f32 to vector<8x256xf32>
    %249 = arith.cmpf oge, %203, %248 : vector<8x256xf32>
    %cst_78 = arith.constant 1.000000e+00 : f32
    %250 = vector.broadcast %cst_78 : f32 to vector<8x256xf32>
    %251 = arith.subf %250, %247 : vector<8x256xf32>
    %cst_79 = arith.constant 1.000000e+00 : f32
    %252 = vector.broadcast %cst_79 : f32 to vector<8x256xf32>
    %253 = arith.subf %247, %252 : vector<8x256xf32>
    %254 = arith.select %249, %251, %253 : vector<8x256xi1>, vector<8x256xf32>
    %cst_80 = arith.constant 1.000000e+00 : f32
    %255 = vector.broadcast %cst_80 : f32 to vector<8x256xf32>
    %256 = arith.addf %254, %255 : vector<8x256xf32>
    %257 = arith.mulf %201, %256 : vector<8x256xf32>
    %258 = arith.addf %199, %257 : vector<8x256xf32>
    %c0_81 = arith.constant 0 : index
    %c0_82 = arith.constant 0 : index
    %259 = vector.load %arg2[%c0_81, %c0_82] : memref<8x256xf32, #tpu.memory_space<vmem>>, vector<8x256xf32>
    tpu.vector_store %arg2[%c0_81, %c0_82], %258 {strides = array<i32>} : memref<8x256xf32, #tpu.memory_space<vmem>>, vector<8x256xf32>,
    return
  }
}

</mosaic_0001>

<bundles_post_ra>
// kernel: model_forward.1
= control target key start
LH: loop header
LB: loop body
LE: loop exit
PB: predicated region body
PF: predicated region fallthrough
CT: control target
= control target key end

     0   :  { %s577_s11 = smov 112   ;;  %s578_s12 = smov 111   ;;  %v13_v2 = vlaneseq  ;;  %v585_v24 = vmov 72   ;;  %s761_s0 = inlined_call_operand.vmem [shape: f32[8,256], index: 0, kind: input, shape index: {}]   ;;  %s762_s1 = inlined_call_operand.vmem [shape: f32[24,73], index: 1, kind: input, shape index: {}]   ;;  %s763_s2 = inlined_call_operand.vmem [shape: f32[8,256], index: 2, kind: output, shape index: {}]  }
   0x1   :  { %v605_v0 = vld [vmem:[%s761_s0] sm:$0xff]  ;;  %s579_s13 = smov 113   ;;  %v613_v1 = vld [vmem:[%s761_s0 + $0x8] sm:$0xff]  ;;  %s580_s16 = smov 127   ;;  %550 = vset.pattern.permute.xlu1 %v585_v24  ;;  %551 = vset.pattern.permute.xlu2 %v585_v24 }
   0x2   :  { %132 = vrot.lane.b32.xlu1 %v605_v0, %s577_s11  ;;  %145 = vrot.lane.b32.xlu0 %v605_v0, %s578_s12  ;;  %s581_s17 = smov 1   ;;  %s582_s18 = smov 15   ;;  %v628_v3 = vand.u32 127, %v13_v2  ;;  %v160_v25 = vld [vmem:[%s762_s1] sm:$0xff]  ;;  %v161_v45 = vld [vmem:[%s762_s1 + $0x8] sm:$0xff] }
   0x3   :  { %117 = vrot.lane.b32.xlu2 %v605_v0, %s579_s13  ;;  %s583_s0 = smov 16   ;;  %s584_s19 = smov 17  }
   0x4   :  { %v15_v5 = vadd.s32 128, %v628_v3  ;;  %v20_v9 = vand.u32 15, %v628_v3  ;;  %vm149_vm2 = vcmp.lt.s32.totalorder %v628_v3, 111  ;;  %vm136_vm5 = vcmp.lt.s32.totalorder %v628_v3, 112 }
   0x5   :  { %vm121_vm7 = vcmp.lt.s32.totalorder %v628_v3, 113  ;;  %vm108_vm10 = vcmp.lt.s32.totalorder %v628_v3, 127  ;;  %vm95_vm11 = vcmp.lt.s32.totalorder %v628_v3, 1  ;;  %vm44_vm12 = vcmp.ge.s32.totalorder %v628_v3, 16 }
   0x6   :  { %v27_v8 = vand.u32 15, %v15_v5  ;;  %vm47_vm1 = vcmp.lt.s32.totalorder %v15_v5, 240  ;;  %vm637_vm3 = vcmp.lt.s32.totalorder %v20_v9, 15  ;;  %vm652_vm8 = vcmp.ge.s32.totalorder %v20_v9, 1 }
   0x7   :  { %vm80_vm13 = vcmp.lt.s32.totalorder %v628_v3, 15  ;;  %vm83_vm14 = vmand %vm637_vm3, %vm44_vm12  ;;  %vm67_vm15 = vcmp.lt.s32.totalorder %v628_v3, 16 }
   0x8   :  { %vm632_vm0 = vcmp.lt.s32.totalorder %v27_v8, 15  ;;  %vm645_vm6 = vcmp.ge.s32.totalorder %v27_v8, 1 }
   0x9   :  { %vm153_vm4 = vmand %vm632_vm0, %vm47_vm1 }
   0xa   :  { %134 = vrot.lane.b32.xlu1 %v613_v1, %s577_s11  ;;  %147 = vrot.lane.b32.xlu0 %v613_v1, %s578_s12  ;;  %vm125_vm9 = vmand %vm645_vm6, %vm47_vm1 }
   0xb   :  { %119 = vrot.lane.b32.xlu2 %v613_v1, %s579_s13 }
  0x12   :  { %106 = vrot.lane.b32.xlu1 %v613_v1, %s580_s16  ;;  %104 = vrot.lane.b32.xlu0 %v605_v0, %s580_s16 }
  0x13   :  { %91 = vrot.lane.b32.xlu2 %v605_v0, %s581_s17 }
  0x1a   :  { %76 = vrot.lane.b32.xlu1 %v605_v0, %s582_s18  ;;  %93 = vrot.lane.b32.xlu0 %v613_v1, %s581_s17 }
  0x1b   :  { %78 = vrot.lane.b32.xlu2 %v613_v1, %s582_s18 }
  0x22   :  { %65 = vrot.lane.b32.xlu1 %v613_v1, %s583_s0  ;;  %63 = vrot.lane.b32.xlu0 %v605_v0, %s583_s0 }
  0x23   :  { %48 = vrot.lane.b32.xlu2 %v605_v0, %s584_s19 }
  0x2a   :  { %50 = vrot.lane.b32.xlu0 %v613_v1, %s584_s19  ;;  %165 = vperm.xlu1 %550, %v160_v25  }
  0x2b   :  { %170 = vperm.xlu2 %551, %v161_v45  }
  0x5d   :  { %v118_v4 = vpop.permute.xlu2 %117 }
  0x65   :  { %v120_v10 = vpop.permute.xlu2 %119 }
  0x66   :  { %v122_v22 = vsel %vm121_vm7, %v118_v4, %v120_v10  ;;  %v123_v23 = vsel %vm121_vm7, %v120_v10, %v118_v4 }
  0x6d   :  { %v92_v21 = vpop.permute.xlu2 %91 }
  0x74   :  { %v133_v6 = vpop.permute.xlu1 %132  ;;  %v146_v7 = vpop.permute.xlu0 %145 }
  0x75   :  { %v79_v30 = vpop.permute.xlu2 %78 }
  0x7c   :  { %v135_v13 = vpop.permute.xlu1 %134  ;;  %v148_v14 = vpop.permute.xlu0 %147 }
  0x7d   :  { %v150_v16 = vsel %vm149_vm2, %v146_v7, %v148_v14  ;;  %v151_v17 = vsel %vm149_vm2, %v148_v14, %v146_v7  ;;  %v137_v18 = vsel %vm136_vm5, %v133_v6, %v135_v13  ;;  %v138_v19 = vsel %vm136_vm5, %v135_v13, %v133_v6  ;;  %v49_v41 = vpop.permute.xlu2 %48  ;;  %vm55_vm2 = vmand %vm652_vm8, %vm44_vm12 }
  0x7e   :  { %514 = vmatpush.msk.msra.mxu0 %vm637_vm3, %v150_v16  ;;  %523 = vmatpush.msk.msra.mxu1 %vm153_vm4, %v151_v17  ;;  %vm307_vm5 = vcmask 64512  }
  0x80   :  { %186 = vmatpush.msra.mxu0 %v137_v18  ;;  %524 = vmatpush.msk.msra.mxu1 %vm47_vm1, %v138_v19  ;;  %vm52_vm1 = vcmp.lt.s32.totalorder %v628_v3, 17 }
  0x82   :  { %515 = vmatpush.msk.msra.mxu0 %vm652_vm8, %v122_v22  ;;  %525 = vmatpush.msk.msra.mxu1 %vm125_vm9, %v123_v23 }
  0x84   :  { %v107_v26 = vpop.permute.xlu1 %106  ;;  %v105_v27 = vpop.permute.xlu0 %104 }
  0x85   :  { %v109_v28 = vsel %vm108_vm10, %v105_v27, %v107_v26  ;;  %v110_v29 = vsel %vm108_vm10, %v107_v26, %v105_v27 }
  0x86   :  { %516 = vmatpush.msk.msra.mxu0 %vm637_vm3, %v109_v28  ;;  %526 = vmatpush.msk.msra.mxu1 %vm632_vm0, %v110_v29 }
  0x88   :  { %189 = vmatpush.msra.mxu0 %v605_v0  ;;  %212 = vmatpush.msra.mxu1 %v613_v1 }
  0x8c   :  { %v77_v31 = vpop.permute.xlu1 %76  ;;  %v94_v32 = vpop.permute.xlu0 %93 }
  0x8d   :  { %v97_v33 = vsel %vm95_vm11, %v94_v32, %v92_v21  ;;  %v96_v34 = vsel %vm95_vm11, %v92_v21, %v94_v32  ;;  %v82_v35 = vsel %vm80_vm13, %v79_v30, %v77_v31  ;;  %v81_v36 = vsel %vm80_vm13, %v77_v31, %v79_v30  ;;  %v162_v31 = vld [vmem:[%s762_s1 + $0x10] sm:$0xff] }
  0x8e   :  { %517 = vmatpush.msk.msra.mxu0 %vm652_vm8, %v97_v33  ;;  %527 = vmatpush.msk.msra.mxu1 %vm645_vm6, %v96_v34  ;;  %v586_v32 = vmov 8  }
  0x8f   :  { %552 = vset.pattern.permute.xlu0 %v586_v32 }
  0x90   :  { %518 = vmatpush.msk.msra.mxu0 %vm83_vm14, %v82_v35  ;;  %528 = vmatpush.msk.msra.mxu1 %vm632_vm0, %v81_v36  ;;  %vm173_vm0 = vcmask 588800  }
  0x91   :  { %304 = vperm.xlu0 %552, %v162_v31  }
  0x94   :  { %v66_v37 = vpop.permute.xlu1 %65  ;;  %v64_v38 = vpop.permute.xlu0 %63 }
  0x95   :  { %v69_v39 = vsel %vm67_vm15, %v66_v37, %v64_v38  ;;  %v68_v40 = vsel %vm67_vm15, %v64_v38, %v66_v37 }
  0x96   :  { %519 = vmatpush.msk.msra.mxu0 %vm44_vm12, %v69_v39  ;;  %215 = vmatpush.msra.mxu1 %v68_v40 }
  0x9c   :  { %v51_v42 = vpop.permute.xlu0 %50  ;;  %v166_v46 = vpop.permute.xlu1 %165 }
  0x9d   :  { %v54_v43 = vsel %vm52_vm1, %v51_v42, %v49_v41  ;;  %v53_v44 = vsel %vm52_vm1, %v49_v41, %v51_v42 }
  0x9e   :  { %520 = vmatpush.msk.msra.mxu0 %vm55_vm2, %v54_v43  ;;  %529 = vmatpush.msk.msra.mxu1 %vm645_vm6, %v53_v44 }
  0x9f   :  { %521 = vmatmul.msk.f32.vlgmr.msra.gmra.mxu0 %vm173_vm0, %v160_v25  ;;  %530 = vmatmul.msk.f32.vlgmr.msra.gmra.mxu1 %vm173_vm0, %v160_v25 }
  0xa7   :  { %522 = vmatmul.msk.f32.gmra.mxu0 %vm173_vm0, %v161_v45  ;;  %531 = vmatmul.msk.f32.gmra.mxu1 %vm173_vm0, %v161_v45 }
 0x11c   :  { %v195_v47 = vpop.f32.mrf.mxu0  ;;  %v218_v48 = vpop.f32.mrf.mxu1 }
 0x11d   :  { %v698_v49 = vadd.f32 %v195_v47, %v166_v46  ;;  %v700_v50 = vadd.f32 %v218_v48, %v166_v46 }
 0x11f   :  { %v703_v51 = vmul.f32 0.70710677, %v698_v49  ;;  %v706_v52 = vmul.f32 0.70710677, %v700_v50 }
 0x121   :  { %v228_v53 = vand.u32 2147483647, %v703_v51  ;;  %v229_v54 = vand.u32 2147483647, %v706_v52  ;;  %vm290_vm3 = vcmp.ge.f32.partialorder %v703_v51, 0.0  ;;  %vm291_vm4 = vcmp.ge.f32.partialorder %v706_v52, 0.0  ;;  %v171_v51 = vpop.permute.xlu2 %170 }
 0x123   :  { %v230_v55 = vmul.f32 0.5, %v228_v53  ;;  %v231_v56 = vmul.f32 0.5, %v229_v54  ;;  %v278_v36 = vsub.f32 0.0, %v228_v53  ;;  %v279_v38 = vsub.f32 0.0, %v229_v54 }
 0x125   :  { %v232_v57 = vadd.f32 1.0, %v230_v55  ;;  %v233_v58 = vadd.f32 1.0, %v231_v56  ;;  %v280_v42 = vmul.f32 %v278_v36, %v228_v53  ;;  %v281_v44 = vmul.f32 %v279_v38, %v229_v54 }
 0x126   :  { %v224_v53 = vmul.f32 0.5, %v698_v49 }
 0x127   :  { %553 = vrcp.f32 %v232_v57 }
 0x128   :  { %555 = vrcp.f32 %v233_v58 }
 0x12d   :  { %v554_v59 = vpop.eup %553 }
 0x12e   :  { %v556_v60 = vpop.eup %555  ;;  %v236_v61 = vmul.f32 %v554_v59, %v232_v57 }
 0x12f   :  { %v237_v62 = vmul.f32 %v556_v60, %v233_v58 }
 0x130   :  { %v238_v63 = vsub.f32 2.0, %v236_v61 }
 0x131   :  { %v239_v0 = vsub.f32 2.0, %v237_v62 }
 0x132   :  { %v240_v1 = vmul.f32 %v554_v59, %v238_v63 }
 0x133   :  { %v241_v2 = vmul.f32 %v556_v60, %v239_v0 }
 0x134   :  { %v242_v3 = vmul.f32 0.17087276, %v240_v1 }
 0x135   :  { %v243_v4 = vmul.f32 0.17087276, %v241_v2 }
 0x136   :  { %v244_v5 = vadd.f32 -0.82215226, %v242_v3  ;;  %v225_v3 = vmul.f32 0.5, %v700_v50 }
 0x137   :  { %v245_v6 = vadd.f32 -0.82215226, %v243_v4 }
 0x138   :  { %v246_v7 = vmul.f32 %v244_v5, %v240_v1 }
 0x139   :  { %v247_v8 = vmul.f32 %v245_v6, %v241_v2  ;;  %v221_v6 = vpop.f32.mrf.mxu1 }
 0x13a   :  { %v248_v9 = vadd.f32 1.4885159, %v246_v7  ;;  %v719_v52 = vadd.f32 %v221_v6, %v171_v51 }
 0x13b   :  { %v249_v10 = vadd.f32 1.4885159, %v247_v8 }
 0x13c   :  { %v250_v11 = vmul.f32 %v248_v9, %v240_v1  ;;  %v725_v50 = vmul.f32 0.70710677, %v719_v52 }
 0x13d   :  { %v251_v12 = vmul.f32 %v249_v10, %v241_v2 }
 0x13e   :  { %v252_v13 = vadd.f32 -1.135204, %v250_v11  ;;  %v433_v9 = vand.u32 2147483647, %v725_v50  ;;  %vm495_vm7 = vcmp.ge.f32.partialorder %v725_v50, 0.0 }
 0x13f   :  { %v253_v14 = vadd.f32 -1.135204, %v251_v12 }
 0x140   :  { %v254_v15 = vmul.f32 %v252_v13, %v240_v1  ;;  %v435_v11 = vmul.f32 0.5, %v433_v9 }
 0x141   :  { %v255_v16 = vmul.f32 %v253_v14, %v241_v2 }
 0x142   :  { %v256_v17 = vadd.f32 0.27886808, %v254_v15  ;;  %v437_v13 = vadd.f32 1.0, %v435_v11 }
 0x143   :  { %v257_v18 = vadd.f32 0.27886808, %v255_v16 }
 0x144   :  { %v258_v19 = vmul.f32 %v256_v17, %v240_v1 }
 0x145   :  { %v259_v20 = vmul.f32 %v257_v18, %v241_v2 }
 0x146   :  { %v260_v21 = vadd.f32 -0.18628806, %v258_v19 }
 0x147   :  { %v261_v22 = vadd.f32 -0.18628806, %v259_v20 }
 0x148   :  { %v262_v23 = vmul.f32 %v260_v21, %v240_v1 }
 0x149   :  { %v263_v24 = vmul.f32 %v261_v22, %v241_v2 }
 0x14a   :  { %v264_v25 = vadd.f32 0.09678418, %v262_v23 }
 0x14b   :  { %v265_v26 = vadd.f32 0.09678418, %v263_v24 }
 0x14c   :  { %v266_v27 = vmul.f32 %v264_v25, %v240_v1 }
 0x14d   :  { %v267_v28 = vmul.f32 %v265_v26, %v241_v2 }
 0x14e   :  { %v268_v29 = vadd.f32 0.37409195, %v266_v27 }
 0x14f   :  { %v269_v30 = vadd.f32 0.37409195, %v267_v28 }
 0x150   :  { %v270_v33 = vmul.f32 %v268_v29, %v240_v1 }
 0x151   :  { %v271_v34 = vmul.f32 %v269_v30, %v241_v2 }
 0x152   :  { %v272_v35 = vadd.f32 1.0000237, %v270_v33 }
 0x153   :  { %v273_v37 = vadd.f32 1.0000237, %v271_v34 }
 0x154   :  { %v274_v39 = vmul.f32 %v272_v35, %v240_v1 }
 0x155   :  { %v275_v40 = vmul.f32 %v273_v37, %v241_v2 }
 0x156   :  { %v276_v41 = vadd.f32 -1.2655122, %v274_v39 }
 0x157   :  { %v277_v43 = vadd.f32 -1.2655122, %v275_v40 }
 0x158   :  { %v282_v45 = vadd.f32 %v280_v42, %v276_v41 }
 0x159   :  { %v283_v46 = vadd.f32 %v281_v44, %v277_v43 }
 0x15a   :  { %v284_v47 = vmul.f32 1.442695, %v282_v45 }
 0x15b   :  { %v286_v48 = vmul.f32 1.442695, %v283_v46 }
 0x15c   :  { %557 = vpow2.f32 %v284_v47 }
 0x15d   :  { %559 = vpow2.f32 %v286_v48 }
 0x162   :  { %v558_v55 = vpop.eup %557 }
 0x163   :  { %v560_v56 = vpop.eup %559  ;;  %v288_v57 = vmul.f32 %v558_v55, %v240_v1 }
 0x164   :  { %v289_v58 = vmul.f32 %v560_v56, %v241_v2  ;;  %v198_v2 = vpop.f32.mrf.mxu0 }
 0x165   :  { %v292_v59 = vsub.f32 1.0, %v288_v57  ;;  %v532_v60 = vadd.f32 -1.0, %v288_v57  ;;  %v717_v7 = vadd.f32 %v198_v2, %v171_v51 }
 0x166   :  { %v293_v61 = vsub.f32 1.0, %v289_v58  ;;  %v533_v62 = vadd.f32 -1.0, %v289_v58 }
 0x167   :  { %v296_v63 = vsel %vm290_vm3, %v292_v59, %v532_v60  ;;  %v722_v49 = vmul.f32 0.70710677, %v717_v7  ;;  %v483_v59 = vsub.f32 0.0, %v433_v9 }
 0x168   :  { %v298_v54 = vadd.f32 1.0, %v296_v63  ;;  %v297_v0 = vsel %vm291_vm4, %v293_v61, %v533_v62 }
 0x169   :  { %v299_v4 = vadd.f32 1.0, %v297_v0  ;;  %v432_v8 = vand.u32 2147483647, %v722_v49  ;;  %vm494_vm6 = vcmp.ge.f32.partialorder %v722_v49, 0.0  ;;  %v305_v49 = vpop.permute.xlu0 %304 }
 0x16a   :  { %v300_v5 = vmul.f32 %v298_v54, %v224_v53  ;;  %v485_v54 = vmul.f32 %v483_v59, %v433_v9 }
 0x16b   :  { %v301_v1 = vmul.f32 %v299_v4, %v225_v3  ;;  %v434_v10 = vmul.f32 0.5, %v432_v8  ;;  %v482_v57 = vsub.f32 0.0, %v432_v8 }
 0x16c   :  { %325 = vmatpush.msra.mxu2 %v300_v5 }
 0x16d   :  { %345 = vmatpush.msra.mxu3 %v301_v1  ;;  %534 = vmatmul.msk.f32.vlgmr.msra.gmra.mxu2 %vm307_vm5, %v162_v31  ;;  %v436_v12 = vadd.f32 1.0, %v434_v10  ;;  %v484_v63 = vmul.f32 %v482_v57, %v432_v8  ;;  %v428_v8 = vmul.f32 0.5, %v717_v7 }
 0x16e   :  { %535 = vmatmul.msk.f32.vlgmr.msra.gmra.mxu3 %vm307_vm5, %v162_v31 }
 0x16f   :  { %561 = vrcp.f32 %v436_v12 }
 0x170   :  { %563 = vrcp.f32 %v437_v13 }
 0x175   :  { %v562_v14 = vpop.eup %561 }
 0x176   :  { %v564_v15 = vpop.eup %563  ;;  %v440_v16 = vmul.f32 %v562_v14, %v436_v12 }
 0x177   :  { %v441_v17 = vmul.f32 %v564_v15, %v437_v13 }
 0x178   :  { %v442_v18 = vsub.f32 2.0, %v440_v16  ;;  %v429_v16 = vmul.f32 0.5, %v719_v52 }
 0x179   :  { %v443_v19 = vsub.f32 2.0, %v441_v17 }
 0x17a   :  { %v444_v20 = vmul.f32 %v562_v14, %v442_v18 }
 0x17b   :  { %v445_v21 = vmul.f32 %v564_v15, %v443_v19 }
 0x17c   :  { %v446_v22 = vmul.f32 0.17087276, %v444_v20 }
 0x17d   :  { %v447_v23 = vmul.f32 0.17087276, %v445_v21 }
 0x17e   :  { %v448_v24 = vadd.f32 -0.82215226, %v446_v22 }
 0x17f   :  { %v449_v25 = vadd.f32 -0.82215226, %v447_v23 }
 0x180   :  { %v450_v26 = vmul.f32 %v448_v24, %v444_v20 }
 0x181   :  { %v451_v27 = vmul.f32 %v449_v25, %v445_v21 }
 0x182   :  { %v452_v28 = vadd.f32 1.4885159, %v450_v26 }
 0x183   :  { %v453_v29 = vadd.f32 1.4885159, %v451_v27 }
 0x184   :  { %v454_v30 = vmul.f32 %v452_v28, %v444_v20 }
 0x185   :  { %v455_v31 = vmul.f32 %v453_v29, %v445_v21 }
 0x186   :  { %v456_v32 = vadd.f32 -1.135204, %v454_v30 }
 0x187   :  { %v457_v33 = vadd.f32 -1.135204, %v455_v31 }
 0x188   :  { %v458_v34 = vmul.f32 %v456_v32, %v444_v20 }
 0x189   :  { %v459_v35 = vmul.f32 %v457_v33, %v445_v21 }
 0x18a   :  { %v460_v36 = vadd.f32 0.27886808, %v458_v34 }
 0x18b   :  { %v461_v37 = vadd.f32 0.27886808, %v459_v35 }
 0x18c   :  { %v462_v38 = vmul.f32 %v460_v36, %v444_v20 }
 0x18d   :  { %v463_v39 = vmul.f32 %v461_v37, %v445_v21 }
 0x18e   :  { %v464_v40 = vadd.f32 -0.18628806, %v462_v38 }
 0x18f   :  { %v465_v41 = vadd.f32 -0.18628806, %v463_v39 }
 0x190   :  { %v466_v42 = vmul.f32 %v464_v40, %v444_v20 }
 0x191   :  { %v467_v43 = vmul.f32 %v465_v41, %v445_v21 }
 0x192   :  { %v468_v44 = vadd.f32 0.09678418, %v466_v42 }
 0x193   :  { %v469_v45 = vadd.f32 0.09678418, %v467_v43 }
 0x194   :  { %v470_v46 = vmul.f32 %v468_v44, %v444_v20 }
 0x195   :  { %v471_v47 = vmul.f32 %v469_v45, %v445_v21 }
 0x196   :  { %v472_v48 = vadd.f32 0.37409195, %v470_v46 }
 0x197   :  { %v473_v55 = vadd.f32 0.37409195, %v471_v47 }
 0x198   :  { %v474_v56 = vmul.f32 %v472_v48, %v444_v20 }
 0x199   :  { %v475_v58 = vmul.f32 %v473_v55, %v445_v21 }
 0x19a   :  { %v476_v60 = vadd.f32 1.0000237, %v474_v56 }
 0x19b   :  { %v477_v61 = vadd.f32 1.0000237, %v475_v58 }
 0x19c   :  { %v478_v62 = vmul.f32 %v476_v60, %v444_v20 }
 0x19d   :  { %v479_v53 = vmul.f32 %v477_v61, %v445_v21 }
 0x19e   :  { %v480_v0 = vadd.f32 -1.2655122, %v478_v62 }
 0x19f   :  { %v481_v3 = vadd.f32 -1.2655122, %v479_v53 }
 0x1a0   :  { %v486_v4 = vadd.f32 %v484_v63, %v480_v0 }
 0x1a1   :  { %v487_v5 = vadd.f32 %v485_v54, %v481_v3 }
 0x1a2   :  { %v488_v1 = vmul.f32 1.442695, %v486_v4 }
 0x1a3   :  { %v490_v51 = vmul.f32 1.442695, %v487_v5 }
 0x1a4   :  { %565 = vpow2.f32 %v488_v1 }
 0x1a5   :  { %567 = vpow2.f32 %v490_v51 }
 0x1aa   :  { %v566_v2 = vpop.eup %565 }
 0x1ab   :  { %v568_v6 = vpop.eup %567  ;;  %v492_v10 = vmul.f32 %v566_v2, %v444_v20 }
 0x1ac   :  { %v493_v11 = vmul.f32 %v568_v6, %v445_v21 }
 0x1ad   :  { %v496_v12 = vsub.f32 1.0, %v492_v10  ;;  %v538_v13 = vadd.f32 -1.0, %v492_v10 }
 0x1ae   :  { %v497_v9 = vsub.f32 1.0, %v493_v11  ;;  %v539_v14 = vadd.f32 -1.0, %v493_v11 }
 0x1af   :  { %v500_v15 = vsel %vm494_vm6, %v496_v12, %v538_v13 }
 0x1b0   :  { %v502_v17 = vadd.f32 1.0, %v500_v15  ;;  %v501_v18 = vsel %vm495_vm7, %v497_v9, %v539_v14 }
 0x1b1   :  { %v503_v19 = vadd.f32 1.0, %v501_v18 }
 0x1b2   :  { %v733_v22 = vmul.f32 %v502_v17, %v428_v8 }
 0x1b3   :  { %v735_v20 = vmul.f32 %v503_v19, %v429_v16 }
 0x1f0   :  { %v327_v21 = vpop.f32.mrf.mxu2 }
 0x1f1   :  { %v347_v23 = vpop.f32.mrf.mxu3  ;;  %v737_v24 = vadd.f32 %v327_v21, %v305_v49 }
 0x1f2   :  { %v739_v50 = vadd.f32 %v347_v23, %v305_v49 }
 0x1f3   :  { %v742_v7 = vmul.f32 0.70710677, %v737_v24 }
 0x1f4   :  { %v745_v25 = vmul.f32 0.70710677, %v739_v50 }
 0x1f5   :  { %v354_v52 = vand.u32 2147483647, %v742_v7  ;;  %vm416_vm8 = vcmp.ge.f32.partialorder %v742_v7, 0.0 }
 0x1f6   :  { %v355_v26 = vand.u32 2147483647, %v745_v25  ;;  %vm417_vm9 = vcmp.ge.f32.partialorder %v745_v25, 0.0 }
 0x1f7   :  { %v356_v27 = vmul.f32 0.5, %v354_v52  ;;  %v404_v12 = vsub.f32 0.0, %v354_v52 }
 0x1f8   :  { %v357_v28 = vmul.f32 0.5, %v355_v26  ;;  %v405_v8 = vsub.f32 0.0, %v355_v26 }
 0x1f9   :  { %v358_v29 = vadd.f32 1.0, %v356_v27  ;;  %v406_v16 = vmul.f32 %v404_v12, %v354_v52 }
 0x1fa   :  { %v359_v30 = vadd.f32 1.0, %v357_v28  ;;  %v407_v18 = vmul.f32 %v405_v8, %v355_v26  ;;  %v350_v26 = vmul.f32 0.5, %v737_v24 }
 0x1fb   :  { %569 = vrcp.f32 %v358_v29 }
 0x1fc   :  { %571 = vrcp.f32 %v359_v30 }
 0x201   :  { %v570_v31 = vpop.eup %569 }
 0x202   :  { %v572_v32 = vpop.eup %571  ;;  %v362_v33 = vmul.f32 %v570_v31, %v358_v29 }
 0x203   :  { %v363_v34 = vmul.f32 %v572_v32, %v359_v30 }
 0x204   :  { %v364_v35 = vsub.f32 2.0, %v362_v33 }
 0x205   :  { %v365_v36 = vsub.f32 2.0, %v363_v34 }
 0x206   :  { %v366_v37 = vmul.f32 %v570_v31, %v364_v35 }
 0x207   :  { %v367_v38 = vmul.f32 %v572_v32, %v365_v36 }
 0x208   :  { %v368_v39 = vmul.f32 0.17087276, %v366_v37 }
 0x209   :  { %v369_v40 = vmul.f32 0.17087276, %v367_v38 }
 0x20a   :  { %v370_v41 = vadd.f32 -0.82215226, %v368_v39  ;;  %v351_v39 = vmul.f32 0.5, %v739_v50 }
 0x20b   :  { %v371_v42 = vadd.f32 -0.82215226, %v369_v40 }
 0x20c   :  { %v372_v43 = vmul.f32 %v370_v41, %v366_v37 }
 0x20d   :  { %v373_v44 = vmul.f32 %v371_v42, %v367_v38 }
 0x20e   :  { %v374_v45 = vadd.f32 1.4885159, %v372_v43 }
 0x20f   :  { %v375_v46 = vadd.f32 1.4885159, %v373_v44 }
 0x210   :  { %v376_v47 = vmul.f32 %v374_v45, %v366_v37 }
 0x211   :  { %v377_v48 = vmul.f32 %v375_v46, %v367_v38 }
 0x212   :  { %v378_v55 = vadd.f32 -1.135204, %v376_v47 }
 0x213   :  { %v379_v56 = vadd.f32 -1.135204, %v377_v48 }
 0x214   :  { %v380_v57 = vmul.f32 %v378_v55, %v366_v37 }
 0x215   :  { %v381_v58 = vmul.f32 %v379_v56, %v367_v38 }
 0x216   :  { %v382_v59 = vadd.f32 0.27886808, %v380_v57 }
 0x217   :  { %v383_v60 = vadd.f32 0.27886808, %v381_v58 }
 0x218   :  { %v384_v61 = vmul.f32 %v382_v59, %v366_v37 }
 0x219   :  { %v385_v62 = vmul.f32 %v383_v60, %v367_v38 }
 0x21a   :  { %v386_v63 = vadd.f32 -0.18628806, %v384_v61 }
 0x21b   :  { %v387_v53 = vadd.f32 -0.18628806, %v385_v62 }
 0x21c   :  { %v388_v54 = vmul.f32 %v386_v63, %v366_v37 }
 0x21d   :  { %v389_v0 = vmul.f32 %v387_v53, %v367_v38 }
 0x21e   :  { %v390_v3 = vadd.f32 0.09678418, %v388_v54 }
 0x21f   :  { %v391_v4 = vadd.f32 0.09678418, %v389_v0 }
 0x220   :  { %v392_v5 = vmul.f32 %v390_v3, %v366_v37 }
 0x221   :  { %v393_v1 = vmul.f32 %v391_v4, %v367_v38 }
 0x222   :  { %v394_v51 = vadd.f32 0.37409195, %v392_v5 }
 0x223   :  { %v395_v2 = vadd.f32 0.37409195, %v393_v1 }
 0x224   :  { %v396_v6 = vmul.f32 %v394_v51, %v366_v37 }
 0x225   :  { %v397_v10 = vmul.f32 %v395_v2, %v367_v38 }
 0x226   :  { %v398_v11 = vadd.f32 1.0000237, %v396_v6 }
 0x227   :  { %v399_v13 = vadd.f32 1.0000237, %v397_v10 }
 0x228   :  { %v400_v9 = vmul.f32 %v398_v11, %v366_v37 }
 0x229   :  { %v401_v14 = vmul.f32 %v399_v13, %v367_v38 }
 0x22a   :  { %v402_v15 = vadd.f32 -1.2655122, %v400_v9 }
 0x22b   :  { %v403_v17 = vadd.f32 -1.2655122, %v401_v14 }
 0x22c   :  { %v408_v19 = vadd.f32 %v406_v16, %v402_v15 }
 0x22d   :  { %v409_v49 = vadd.f32 %v407_v18, %v403_v17 }
 0x22e   :  { %v410_v21 = vmul.f32 1.442695, %v408_v19 }
 0x22f   :  { %v412_v23 = vmul.f32 1.442695, %v409_v49 }
 0x230   :  { %573 = vpow2.f32 %v410_v21 }
 0x231   :  { %575 = vpow2.f32 %v412_v23 }
 0x236   :  { %v574_v27 = vpop.eup %573 }
 0x237   :  { %v576_v28 = vpop.eup %575  ;;  %v414_v29 = vmul.f32 %v574_v27, %v366_v37 }
 0x238   :  { %v415_v30 = vmul.f32 %v576_v28, %v367_v38 }
 0x239   :  { %v418_v31 = vsub.f32 1.0, %v414_v29  ;;  %v536_v32 = vadd.f32 -1.0, %v414_v29 }
 0x23a   :  { %v419_v33 = vsub.f32 1.0, %v415_v30  ;;  %v537_v34 = vadd.f32 -1.0, %v415_v30 }
 0x23b   :  { %v422_v52 = vsel %vm416_vm8, %v418_v31, %v536_v32 }
 0x23c   :  { %v423_v35 = vsel %vm417_vm9, %v419_v33, %v537_v34  ;;  %v424_v36 = vadd.f32 1.0, %v422_v52 }
 0x23d   :  { %v425_v40 = vadd.f32 1.0, %v423_v35 }
 0x23e   :  { %v426_v41 = vmul.f32 %v424_v36, %v350_v26 }
 0x23f   :  { %v427_v42 = vmul.f32 %v425_v40, %v351_v39 }
 0x240   :  { %v506_v37 = vadd.f32 %v733_v22, %v426_v41 }
 0x241   :  { %v507_v38 = vadd.f32 %v735_v20, %v427_v42 }
 0x242   :  { %508 = vst [vmem:[%s763_s2] sm:$0xff] %v506_v37 }
 0x243   :  { %509 = vst [vmem:[%s763_s2 + $0x8] sm:$0xff] %v507_v38 }

</bundles_post_ra>
